<compile_context>
chip_gen: v5e
topology: v5e:2x2
jax: 0.10.0
libtpu: 0.0.40
codegen_flags: <defaults>
</compile_context>

<pallas_src>
import math

import jax
import jax.numpy as jnp
from jax.experimental import pallas as pl
from jax.experimental.pallas import tpu as pltpu

SLOPE = 0.01
BN_EPS = 1e-5


# ----------------------------- Pallas kernels ------------------------------

def conv1_kernel(slab_ref, w_ref, h_ref, s_ref, q_ref):
    """conv1 as a single MXU matmul + per-channel BN partial stats.

    slab_ref: (1, 9*Cin, HW)  im2col slab for one batch element (lanes = HW)
    w_ref   : (Cmid, 9*Cin)
    h_ref   : (1, Cmid, HW)   raw conv output (pre-BN)
    s_ref   : (1, Cmid, 1)    per-channel sum over HW
    q_ref   : (1, Cmid, 1)    per-channel sum of squares over HW
    """
    acc = jnp.dot(w_ref[...], slab_ref[0], preferred_element_type=jnp.float32)
    h_ref[0] = acc
    s_ref[0] = jnp.sum(acc, axis=1, keepdims=True)
    q_ref[0] = jnp.sum(acc * acc, axis=1, keepdims=True)


def conv2_fused_kernel(slab_ref, scale_ref, shift_ref, w_ref, h_ref, s_ref, q_ref):
    """BN1 + LeakyReLU fused into conv2's prologue, then one MXU matmul.

    slab_ref : (1, 9*Cmid, HW)  im2col slab of the RAW conv1 output
    scale_ref: (9*Cmid, 1)      per-row gamma/sqrt(var+eps)  (BN1, tiled over taps)
    shift_ref: (9*Cmid, HW)     per-row (beta - mean*scale), pre-zeroed where the
                                slab entry came from conv2's spatial zero padding
                                (slab is 0 there too, so the prologue yields exact 0)
    w_ref    : (Cout, 9*Cmid)
    """
    a = slab_ref[0] * scale_ref[...] + shift_ref[...]
    a = jnp.where(a >= 0.0, a, SLOPE * a)        # LeakyReLU(0.01); lrelu(0) == 0
    acc = jnp.dot(w_ref[...], a, preferred_element_type=jnp.float32)
    h_ref[0] = acc
    s_ref[0] = jnp.sum(acc, axis=1, keepdims=True)
    q_ref[0] = jnp.sum(acc * acc, axis=1, keepdims=True)


def bn_lrelu_kernel(h_ref, scale_ref, shift_ref, o_ref):
    """Final BatchNorm (precomputed per-channel scale/shift) + LeakyReLU."""
    y = h_ref[0] * scale_ref[...] + shift_ref[...]
    o_ref[0] = jnp.where(y >= 0.0, y, SLOPE * y)


# --------------------------- pallas_call wrappers ---------------------------

def _conv1(slab, w_mat):
    N, K, HW = slab.shape
    Cout = w_mat.shape[0]
    return pl.pallas_call(
        conv1_kernel,
        out_shape=(jax.ShapeDtypeStruct((N, Cout, HW), jnp.float32),
                   jax.ShapeDtypeStruct((N, Cout, 1), jnp.float32),
                   jax.ShapeDtypeStruct((N, Cout, 1), jnp.float32)),
        grid=(N,),
        in_specs=[
            pl.BlockSpec((1, K, HW), lambda n: (n, 0, 0)),
            pl.BlockSpec((Cout, K), lambda n: (0, 0)),
        ],
        out_specs=(
            pl.BlockSpec((1, Cout, HW), lambda n: (n, 0, 0)),
            pl.BlockSpec((1, Cout, 1), lambda n: (n, 0, 0)),
            pl.BlockSpec((1, Cout, 1), lambda n: (n, 0, 0)),
        ),
        compiler_params=pltpu.CompilerParams(dimension_semantics=("parallel",)),
    )(slab, w_mat)


def _conv2_fused(slab, scale_rows, shift_rows_masked, w_mat):
    N, K, HW = slab.shape
    Cout = w_mat.shape[0]
    return pl.pallas_call(
        conv2_fused_kernel,
        out_shape=(jax.ShapeDtypeStruct((N, Cout, HW), jnp.float32),
                   jax.ShapeDtypeStruct((N, Cout, 1), jnp.float32),
                   jax.ShapeDtypeStruct((N, Cout, 1), jnp.float32)),
        grid=(N,),
        in_specs=[
            pl.BlockSpec((1, K, HW), lambda n: (n, 0, 0)),
            pl.BlockSpec((K, 1), lambda n: (0, 0)),
            pl.BlockSpec((K, HW), lambda n: (0, 0)),
            pl.BlockSpec((Cout, K), lambda n: (0, 0)),
        ],
        out_specs=(
            pl.BlockSpec((1, Cout, HW), lambda n: (n, 0, 0)),
            pl.BlockSpec((1, Cout, 1), lambda n: (n, 0, 0)),
            pl.BlockSpec((1, Cout, 1), lambda n: (n, 0, 0)),
        ),
        compiler_params=pltpu.CompilerParams(dimension_semantics=("parallel",)),
    )(slab, scale_rows, shift_rows_masked, w_mat)


def _bn_lrelu(h, scale, shift):
    N, C, HW = h.shape
    return pl.pallas_call(
        bn_lrelu_kernel,
        out_shape=jax.ShapeDtypeStruct((N, C, HW), jnp.float32),
        grid=(N,),
        in_specs=[
            pl.BlockSpec((1, C, HW), lambda n: (n, 0, 0)),
            pl.BlockSpec((C, 1), lambda n: (0, 0)),
            pl.BlockSpec((C, 1), lambda n: (0, 0)),
        ],
        out_specs=pl.BlockSpec((1, C, HW), lambda n: (n, 0, 0)),
        compiler_params=pltpu.CompilerParams(dimension_semantics=("parallel",)),
    )(h, scale, shift)


# ------------------------------ XLA glue helpers -----------------------------

def _upsample_bilinear_x2_align_corners(x):
    """NCHW (N,C,H,W) -> (N,C,2H,2W); nn.Upsample(scale=2, bilinear, align_corners=True)."""
    N, C, H, W = x.shape
    Ho, Wo = 2 * H, 2 * W

    def coords(n_in, n_out):
        if n_in == 1:
            z = jnp.zeros((n_out,), jnp.int32)
            return z, z, jnp.zeros((n_out,), jnp.float32)
        s = jnp.arange(n_out, dtype=jnp.float32) * (n_in - 1) / (n_out - 1)
        i0 = jnp.floor(s).astype(jnp.int32)
        i1 = jnp.minimum(i0 + 1, n_in - 1)
        return i0, i1, s - i0.astype(jnp.float32)

    y0, y1, wy = coords(H, Ho)
    x0, x1, wx = coords(W, Wo)
    wy = wy[None, None, :, None]
    wx = wx[None, None, None, :]
    ry = x[:, :, y0, :] * (1.0 - wy) + x[:, :, y1, :] * wy        # (N, C, Ho, W)
    return ry[:, :, :, x0] * (1.0 - wx) + ry[:, :, :, x1] * wx    # (N, C, Ho, Wo)


def _im2col_nchw(x):
    """(N, C, H, W) -> (N, 9*C, H*W); taps ordered (dy,dx) row-major, channel minor."""
    N, C, H, W = x.shape
    xp = jnp.pad(x, ((0, 0), (0, 0), (1, 1), (1, 1)))
    taps = [xp[:, :, dy:dy + H, dx:dx + W] for dy in range(3) for dx in range(3)]
    return jnp.concatenate(taps, axis=1).reshape(N, 9 * C, H * W)


def _conv_weight_matrix(w_torch):
    """(Cout, Cin, 3, 3) PyTorch layout -> (Cout, 9*Cin), matching the im2col slab order."""
    Cout, Cin = w_torch.shape[0], w_torch.shape[1]
    return jnp.transpose(w_torch, (0, 2, 3, 1)).reshape(Cout, 9 * Cin)


def _pad_valid_mask(H, W, C):
    """(9*C, H*W) float mask: 1 where the im2col entry is real data, 0 where zero padding."""
    y = jnp.arange(H)[:, None]
    x = jnp.arange(W)[None, :]
    rows = []
    for dy in range(3):
        for dx in range(3):
            valid = ((y + dy - 1 >= 0) & (y + dy - 1 < H) &
                     (x + dx - 1 >= 0) & (x + dx - 1 < W))
            rows.append(valid.reshape(H * W))
    m = jnp.stack(rows, axis=0).astype(jnp.float32)               # (9, HW)
    return jnp.repeat(m, C, axis=0)                               # row t*C + c


def _bn_scale_shift(csum, csq, gamma, beta, count):
    """Collapse per-batch partial sums into the BN affine: y = x*scale + shift."""
    s = jnp.sum(csum[:, :, 0], axis=0)
    q = jnp.sum(csq[:, :, 0], axis=0)
    mean = s / count
    var = q / count - mean * mean            # biased variance (training-mode BN)
    scale = gamma * jax.lax.rsqrt(var + BN_EPS)
    shift = beta - mean * scale
    return scale[:, None], shift[:, None]    # (C, 1)


# ------------------------------ forward pass --------------------------------

def up_forward(params, x1, x2):
    """Semantics of Up.forward(x1, x2) with bilinear=True.  Inputs/outputs NCHW."""
    x1 = _upsample_bilinear_x2_align_corners(x1)
    diffY = x2.shape[2] - x1.shape[2]
    diffX = x2.shape[3] - x1.shape[3]
    x1 = jnp.pad(x1, ((0, 0), (0, 0),
                      (diffY // 2, diffY - diffY // 2),
                      (diffX // 2, diffX - diffX // 2)))
    x = jnp.concatenate([x2, x1], axis=1)     # cat([x2, x1], dim=1)

    N, Cin, H, W = x.shape
    HW = H * W
    count = float(N * HW)
    Cmid = params["w1"].shape[0]
    Cout = params["w2"].shape[0]

    # conv1: one matmul per batch element, BN partial stats computed in-kernel.
    slab1 = _im2col_nchw(x)                                       # (N, 9*Cin, HW)
    h1, s1, q1 = _conv1(slab1, _conv_weight_matrix(params["w1"]))

    # BN1 + LeakyReLU folded into conv2's prologue (applied to the raw-h1 slab).
    scale1, shift1 = _bn_scale_shift(s1, q1, params["g1"], params["be1"], count)
    slab2 = _im2col_nchw(h1.reshape(N, Cmid, H, W))               # (N, 9*Cmid, HW)
    scale_rows = jnp.tile(scale1, (9, 1))                         # (9*Cmid, 1)
    # shift pre-zeroed at conv2's spatial-padding slab positions; slab is 0 there too,
    # so the in-kernel affine + LeakyReLU keeps them exactly 0.
    shift_rows_masked = jnp.tile(shift1, (9, 1)) * _pad_valid_mask(H, W, Cmid)
    h2, s2, q2 = _conv2_fused(slab2, scale_rows, shift_rows_masked,
                              _conv_weight_matrix(params["w2"]))

    # BN2 + LeakyReLU finalize.
    scale2, shift2 = _bn_scale_shift(s2, q2, params["g2"], params["be2"], count)
    out = _bn_lrelu(h2, scale2, shift2)                           # (N, Cout, HW)
    return out.reshape(N, Cout, H, W)


# --------------------------- parameter init ---------------------------------

def init_up_params(key, in_channels, out_channels):
    """DoubleConv(in_channels, out_channels, mid=in_channels//2), Kaiming-normal conv weights.

    Conv biases are omitted on purpose: a constant per-channel bias is exactly
    cancelled by the training-mode BatchNorm mean subtraction that follows each conv.
    """
    mid = in_channels // 2
    gain = math.sqrt(2.0 / (1.0 + SLOPE ** 2))

    def kaiming(k, cout, cin):
        fan_in = cin * 9
        return jax.random.normal(k, (cout, cin, 3, 3), jnp.float32) * (gain / math.sqrt(fan_in))

    k1, k2 = jax.random.split(key, 2)
    return {
        "w1": kaiming(k1, mid, in_channels),
        "g1": jnp.ones((mid,), jnp.float32),
        "be1": jnp.zeros((mid,), jnp.float32),
        "w2": kaiming(k2, out_channels, mid),
        "g2": jnp.ones((out_channels,), jnp.float32),
        "be2": jnp.zeros((out_channels,), jnp.float32),
    }


# --------------------------- pure-XLA reference ------------------------------

def reference_forward(params, x1, x2):
    x1 = _upsample_bilinear_x2_align_corners(x1)
    diffY = x2.shape[2] - x1.shape[2]
    diffX = x2.shape[3] - x1.shape[3]
    x1 = jnp.pad(x1, ((0, 0), (0, 0),
                      (diffY // 2, diffY - diffY // 2),
                      (diffX // 2, diffX - diffX // 2)))
    x = jnp.concatenate([x2, x1], axis=1)

    def conv_bn_lrelu(h, w, g, b):
        y = jax.lax.conv_general_dilated(
            h, w, window_strides=(1, 1), padding=((1, 1), (1, 1)),
            dimension_numbers=("NCHW", "OIHW", "NCHW"))
        mean = jnp.mean(y, axis=(0, 2, 3), keepdims=True)
        var = jnp.mean((y - mean) ** 2, axis=(0, 2, 3), keepdims=True)
        y = (y - mean) * jax.lax.rsqrt(var + BN_EPS) * g[None, :, None, None] \
            + b[None, :, None, None]
        return jnp.where(y >= 0.0, y, SLOPE * y)

    h = conv_bn_lrelu(x, params["w1"], params["g1"], params["be1"])
    return conv_bn_lrelu(h, params["w2"], params["g2"], params["be2"])


# ------------------------------- main ----------------------------------------

if __name__ == "__main__":
    key = jax.random.PRNGKey(0)
    kx1, kx2, kp = jax.random.split(key, 3)

    N = 2
    in_channels = 8      # channels after concat (x1 upsampled: 4, skip x2: 4)
    out_channels = 4

    # NCHW inputs, like the PyTorch module.
    x1 = jax.random.normal(kx1, (N, in_channels // 2, 8, 8), jnp.float32)    # decoder feature
    x2 = jax.random.normal(kx2, (N, in_channels // 2, 16, 16), jnp.float32)  # skip connection
    params = init_up_params(kp, in_channels, out_channels)

    out = jax.jit(up_forward)(params, x1, x2)
    jax.block_until_ready(out)
    assert out.shape == (N, out_channels, 16, 16)

    ref = reference_forward(params, x1, x2)
    err = float(jnp.max(jnp.abs(out - ref)))
    assert err < 2e-3, f"mismatch vs XLA reference: max abs err {err}"

    print("KERNEL_OK")
</pallas_src>

<mosaic_0001>
module attributes {stable_mosaic.version = 11 : i64} {
  func.func @conv1_kernel(%arg0: i32, %arg1: memref<1x72x256xf32, #tpu.memory_space<vmem>>, %arg2: memref<4x72xf32, #tpu.memory_space<vmem>>, %arg3: memref<1x4x256xf32, #tpu.memory_space<vmem>>, %arg4: memref<1x4x1xf32, #tpu.memory_space<vmem>>, %arg5: memref<1x4x1xf32, #tpu.memory_space<vmem>>) attributes {dimension_semantics = [#tpu.dimension_semantics<parallel>], iteration_bounds = array<i64: 2>, scalar_prefetch = 0 : i64, scratch_operands = 0 : i64, tpu.core_type = #tpu.core_type<tc>, window_params = [{transform_indices = @transform_0, window_bounds = array<i64: 1, 72, 256>}, {pipeline_mode = #tpu.pipeline_mode<synchronous>, transform_indices = @transform_1, window_bounds = array<i64: 4, 72>}, {transform_indices = @transform_2, window_bounds = array<i64: 1, 4, 256>}, {transform_indices = @transform_3, window_bounds = array<i64: 1, 4, 1>}, {transform_indices = @transform_4, window_bounds = array<i64: 1, 4, 1>}]} {
    %c0 = arith.constant 0 : index
    %c0_0 = arith.constant 0 : index
    %0 = vector.load %arg2[%c0, %c0_0] : memref<4x72xf32, #tpu.memory_space<vmem>>, vector<4x72xf32>
    %c0_1 = arith.constant 0 : index
    %c0_2 = arith.constant 0 : index
    %c0_3 = arith.constant 0 : index
    %1 = vector.load %arg1[%c0_1, %c0_2, %c0_3] : memref<1x72x256xf32, #tpu.memory_space<vmem>>, vector<1x72x256xf32>
    %2 = vector.shape_cast %1 : vector<1x72x256xf32> to vector<72x256xf32>
    %cst = arith.constant dense<0.000000e+00> : vector<4x256xf32>
    %3 = tpu.matmul %0, %2, %cst {dimension_numbers = #tpu.dot_dimension_numbers<[1], [0], [0], [1], [0, 0, 1, 1], [], []>} : vector<4x72xf32>, vector<72x256xf32>, vector<4x256xf32> -> vector<4x256xf32>
    %c0_4 = arith.constant 0 : index
    %c0_5 = arith.constant 0 : index
    %c0_6 = arith.constant 0 : index
    %4 = vector.load %arg3[%c0_4, %c0_5, %c0_6] : memref<1x4x256xf32, #tpu.memory_space<vmem>>, vector<1x4x256xf32>
    %5 = vector.shape_cast %4 : vector<1x4x256xf32> to vector<4x256xf32>
    %6 = vector.shape_cast %3 : vector<4x256xf32> to vector<1x4x256xf32>
    tpu.vector_store %arg3[%c0_4, %c0_5, %c0_6], %6 {strides = array<i32>} : memref<1x4x256xf32, #tpu.memory_space<vmem>>, vector<1x4x256xf32>,
    %cst_7 = arith.constant dense<0.000000e+00> : vector<4xf32>
    %7 = vector.multi_reduction <add>, %3, %cst_7 [1] : vector<4x256xf32> to vector<4xf32>
    %8 = vector.shape_cast %7 : vector<4xf32> to vector<4x1xf32>
    %c0_8 = arith.constant 0 : index
    %c0_9 = arith.constant 0 : index
    %c0_10 = arith.constant 0 : index
    %9 = vector.load %arg4[%c0_8, %c0_9, %c0_10] : memref<1x4x1xf32, #tpu.memory_space<vmem>>, vector<1x4x1xf32>
    %10 = vector.shape_cast %9 : vector<1x4x1xf32> to vector<4x1xf32>
    %11 = vector.shape_cast %8 : vector<4x1xf32> to vector<1x4x1xf32>
    tpu.vector_store %arg4[%c0_8, %c0_9, %c0_10], %11 {strides = array<i32>} : memref<1x4x1xf32, #tpu.memory_space<vmem>>, vector<1x4x1xf32>,
    %12 = arith.mulf %3, %3 : vector<4x256xf32>
    %cst_11 = arith.constant dense<0.000000e+00> : vector<4xf32>
    %13 = vector.multi_reduction <add>, %12, %cst_11 [1] : vector<4x256xf32> to vector<4xf32>
    %14 = vector.shape_cast %13 : vector<4xf32> to vector<4x1xf32>
    %c0_12 = arith.constant 0 : index
    %c0_13 = arith.constant 0 : index
    %c0_14 = arith.constant 0 : index
    %15 = vector.load %arg5[%c0_12, %c0_13, %c0_14] : memref<1x4x1xf32, #tpu.memory_space<vmem>>, vector<1x4x1xf32>
    %16 = vector.shape_cast %15 : vector<1x4x1xf32> to vector<4x1xf32>
    %17 = vector.shape_cast %14 : vector<4x1xf32> to vector<1x4x1xf32>
    tpu.vector_store %arg5[%c0_12, %c0_13, %c0_14], %17 {strides = array<i32>} : memref<1x4x1xf32, #tpu.memory_space<vmem>>, vector<1x4x1xf32>,
    return
  }
  func.func @transform_0(%arg0: i32) -> (i32, i32, i32) {
    %c0_i32 = arith.constant 0 : i32
    %c0_i32_0 = arith.constant 0 : i32
    %c0_i32_1 = arith.constant 0 : i32
    return %arg0, %c0_i32, %c0_i32_0 : i32, i32, i32
  }
  func.func @transform_1(%arg0: i32) -> (i32, i32) {
    %c0_i32 = arith.constant 0 : i32
    %c0_i32_0 = arith.constant 0 : i32
    %c0_i32_1 = arith.constant 0 : i32
    return %c0_i32, %c0_i32_0 : i32, i32
  }
  func.func @transform_2(%arg0: i32) -> (i32, i32, i32) {
    %c0_i32 = arith.constant 0 : i32
    %c0_i32_0 = arith.constant 0 : i32
    %c0_i32_1 = arith.constant 0 : i32
    return %arg0, %c0_i32, %c0_i32_0 : i32, i32, i32
  }
  func.func @transform_3(%arg0: i32) -> (i32, i32, i32) {
    %c0_i32 = arith.constant 0 : i32
    %c0_i32_0 = arith.constant 0 : i32
    %c0_i32_1 = arith.constant 0 : i32
    return %arg0, %c0_i32, %c0_i32_0 : i32, i32, i32
  }
  func.func @transform_4(%arg0: i32) -> (i32, i32, i32) {
    %c0_i32 = arith.constant 0 : i32
    %c0_i32_0 = arith.constant 0 : i32
    %c0_i32_1 = arith.constant 0 : i32
    return %arg0, %c0_i32, %c0_i32_0 : i32, i32, i32
  }
}

module attributes {stable_mosaic.version = 11 : i64} {
  func.func @conv2_fused_kernel(%arg0: i32, %arg1: memref<1x36x256xf32, #tpu.memory_space<vmem>>, %arg2: memref<36x1xf32, #tpu.memory_space<vmem>>, %arg3: memref<36x256xf32, #tpu.memory_space<vmem>>, %arg4: memref<4x36xf32, #tpu.memory_space<vmem>>, %arg5: memref<1x4x256xf32, #tpu.memory_space<vmem>>, %arg6: memref<1x4x1xf32, #tpu.memory_space<vmem>>, %arg7: memref<1x4x1xf32, #tpu.memory_space<vmem>>) attributes {dimension_semantics = [#tpu.dimension_semantics<parallel>], iteration_bounds = array<i64: 2>, scalar_prefetch = 0 : i64, scratch_operands = 0 : i64, tpu.core_type = #tpu.core_type<tc>, window_params = [{transform_indices = @transform_0, window_bounds = array<i64: 1, 36, 256>}, {pipeline_mode = #tpu.pipeline_mode<synchronous>, transform_indices = @transform_1, window_bounds = array<i64: 36, 1>}, {pipeline_mode = #tpu.pipeline_mode<synchronous>, transform_indices = @transform_2, window_bounds = array<i64: 36, 256>}, {pipeline_mode = #tpu.pipeline_mode<synchronous>, transform_indices = @transform_3, window_bounds = array<i64: 4, 36>}, {transform_indices = @transform_4, window_bounds = array<i64: 1, 4, 256>}, {transform_indices = @transform_5, window_bounds = array<i64: 1, 4, 1>}, {transform_indices = @transform_6, window_bounds = array<i64: 1, 4, 1>}]} {
    %c0 = arith.constant 0 : index
    %c0_0 = arith.constant 0 : index
    %c0_1 = arith.constant 0 : index
    %0 = vector.load %arg1[%c0, %c0_0, %c0_1] : memref<1x36x256xf32, #tpu.memory_space<vmem>>, vector<1x36x256xf32>
    %1 = vector.shape_cast %0 : vector<1x36x256xf32> to vector<36x256xf32>
    %c0_2 = arith.constant 0 : index
    %c0_3 = arith.constant 0 : index
    %2 = vector.load %arg2[%c0_2, %c0_3] : memref<36x1xf32, #tpu.memory_space<vmem>>, vector<36x1xf32>
    %3 = vector.broadcast %2 : vector<36x1xf32> to vector<36x256xf32>
    %4 = arith.mulf %1, %3 : vector<36x256xf32>
    %c0_4 = arith.constant 0 : index
    %c0_5 = arith.constant 0 : index
    %5 = vector.load %arg3[%c0_4, %c0_5] : memref<36x256xf32, #tpu.memory_space<vmem>>, vector<36x256xf32>
    %6 = arith.addf %4, %5 : vector<36x256xf32>
    %cst = arith.constant 0.000000e+00 : f32
    %7 = vector.broadcast %cst : f32 to vector<36x256xf32>
    %8 = arith.cmpf oge, %6, %7 : vector<36x256xf32>
    %cst_6 = arith.constant 0.00999999977 : f32
    %9 = vector.broadcast %cst_6 : f32 to vector<36x256xf32>
    %10 = arith.mulf %9, %6 : vector<36x256xf32>
    %11 = arith.select %8, %6, %10 : vector<36x256xi1>, vector<36x256xf32>
    %c0_7 = arith.constant 0 : index
    %c0_8 = arith.constant 0 : index
    %12 = vector.load %arg4[%c0_7, %c0_8] : memref<4x36xf32, #tpu.memory_space<vmem>>, vector<4x36xf32>
    %cst_9 = arith.constant dense<0.000000e+00> : vector<4x256xf32>
    %13 = tpu.matmul %12, %11, %cst_9 {dimension_numbers = #tpu.dot_dimension_numbers<[1], [0], [0], [1], [0, 0, 1, 1], [], []>} : vector<4x36xf32>, vector<36x256xf32>, vector<4x256xf32> -> vector<4x256xf32>
    %c0_10 = arith.constant 0 : index
    %c0_11 = arith.constant 0 : index
    %c0_12 = arith.constant 0 : index
    %14 = vector.load %arg5[%c0_10, %c0_11, %c0_12] : memref<1x4x256xf32, #tpu.memory_space<vmem>>, vector<1x4x256xf32>
    %15 = vector.shape_cast %14 : vector<1x4x256xf32> to vector<4x256xf32>
    %16 = vector.shape_cast %13 : vector<4x256xf32> to vector<1x4x256xf32>
    tpu.vector_store %arg5[%c0_10, %c0_11, %c0_12], %16 {strides = array<i32>} : memref<1x4x256xf32, #tpu.memory_space<vmem>>, vector<1x4x256xf32>,
    %cst_13 = arith.constant dense<0.000000e+00> : vector<4xf32>
    %17 = vector.multi_reduction <add>, %13, %cst_13 [1] : vector<4x256xf32> to vector<4xf32>
    %18 = vector.shape_cast %17 : vector<4xf32> to vector<4x1xf32>
    %c0_14 = arith.constant 0 : index
    %c0_15 = arith.constant 0 : index
    %c0_16 = arith.constant 0 : index
    %19 = vector.load %arg6[%c0_14, %c0_15, %c0_16] : memref<1x4x1xf32, #tpu.memory_space<vmem>>, vector<1x4x1xf32>
    %20 = vector.shape_cast %19 : vector<1x4x1xf32> to vector<4x1xf32>
    %21 = vector.shape_cast %18 : vector<4x1xf32> to vector<1x4x1xf32>
    tpu.vector_store %arg6[%c0_14, %c0_15, %c0_16], %21 {strides = array<i32>} : memref<1x4x1xf32, #tpu.memory_space<vmem>>, vector<1x4x1xf32>,
    %22 = arith.mulf %13, %13 : vector<4x256xf32>
    %cst_17 = arith.constant dense<0.000000e+00> : vector<4xf32>
    %23 = vector.multi_reduction <add>, %22, %cst_17 [1] : vector<4x256xf32> to vector<4xf32>
    %24 = vector.shape_cast %23 : vector<4xf32> to vector<4x1xf32>
    %c0_18 = arith.constant 0 : index
    %c0_19 = arith.constant 0 : index
    %c0_20 = arith.constant 0 : index
    %25 = vector.load %arg7[%c0_18, %c0_19, %c0_20] : memref<1x4x1xf32, #tpu.memory_space<vmem>>, vector<1x4x1xf32>
    %26 = vector.shape_cast %25 : vector<1x4x1xf32> to vector<4x1xf32>
    %27 = vector.shape_cast %24 : vector<4x1xf32> to vector<1x4x1xf32>
    tpu.vector_store %arg7[%c0_18, %c0_19, %c0_20], %27 {strides = array<i32>} : memref<1x4x1xf32, #tpu.memory_space<vmem>>, vector<1x4x1xf32>,
    return
  }
  func.func @transform_0(%arg0: i32) -> (i32, i32, i32) {
    %c0_i32 = arith.constant 0 : i32
    %c0_i32_0 = arith.constant 0 : i32
    %c0_i32_1 = arith.constant 0 : i32
    return %arg0, %c0_i32, %c0_i32_0 : i32, i32, i32
  }
  func.func @transform_1(%arg0: i32) -> (i32, i32) {
    %c0_i32 = arith.constant 0 : i32
    %c0_i32_0 = arith.constant 0 : i32
    %c0_i32_1 = arith.constant 0 : i32
    return %c0_i32, %c0_i32_0 : i32, i32
  }
  func.func @transform_2(%arg0: i32) -> (i32, i32) {
    %c0_i32 = arith.constant 0 : i32
    %c0_i32_0 = arith.constant 0 : i32
    %c0_i32_1 = arith.constant 0 : i32
    return %c0_i32, %c0_i32_0 : i32, i32
  }
  func.func @transform_3(%arg0: i32) -> (i32, i32) {
    %c0_i32 = arith.constant 0 : i32
    %c0_i32_0 = arith.constant 0 : i32
    %c0_i32_1 = arith.constant 0 : i32
    return %c0_i32, %c0_i32_0 : i32, i32
  }
  func.func @transform_4(%arg0: i32) -> (i32, i32, i32) {
    %c0_i32 = arith.constant 0 : i32
    %c0_i32_0 = arith.constant 0 : i32
    %c0_i32_1 = arith.constant 0 : i32
    return %arg0, %c0_i32, %c0_i32_0 : i32, i32, i32
  }
  func.func @transform_5(%arg0: i32) -> (i32, i32, i32) {
    %c0_i32 = arith.constant 0 : i32
    %c0_i32_0 = arith.constant 0 : i32
    %c0_i32_1 = arith.constant 0 : i32
    return %arg0, %c0_i32, %c0_i32_0 : i32, i32, i32
  }
  func.func @transform_6(%arg0: i32) -> (i32, i32, i32) {
    %c0_i32 = arith.constant 0 : i32
    %c0_i32_0 = arith.constant 0 : i32
    %c0_i32_1 = arith.constant 0 : i32
    return %arg0, %c0_i32, %c0_i32_0 : i32, i32, i32
  }
}

module attributes {stable_mosaic.version = 11 : i64} {
  func.func @bn_lrelu_kernel(%arg0: i32, %arg1: memref<1x4x256xf32, #tpu.memory_space<vmem>>, %arg2: memref<4x1xf32, #tpu.memory_space<vmem>>, %arg3: memref<4x1xf32, #tpu.memory_space<vmem>>, %arg4: memref<1x4x256xf32, #tpu.memory_space<vmem>>) attributes {dimension_semantics = [#tpu.dimension_semantics<parallel>], iteration_bounds = array<i64: 2>, scalar_prefetch = 0 : i64, scratch_operands = 0 : i64, tpu.core_type = #tpu.core_type<tc>, window_params = [{transform_indices = @transform_0, window_bounds = array<i64: 1, 4, 256>}, {pipeline_mode = #tpu.pipeline_mode<synchronous>, transform_indices = @transform_1, window_bounds = array<i64: 4, 1>}, {pipeline_mode = #tpu.pipeline_mode<synchronous>, transform_indices = @transform_2, window_bounds = array<i64: 4, 1>}, {transform_indices = @transform_3, window_bounds = array<i64: 1, 4, 256>}]} {
    %c0 = arith.constant 0 : index
    %c0_0 = arith.constant 0 : index
    %c0_1 = arith.constant 0 : index
    %0 = vector.load %arg1[%c0, %c0_0, %c0_1] : memref<1x4x256xf32, #tpu.memory_space<vmem>>, vector<1x4x256xf32>
    %1 = vector.shape_cast %0 : vector<1x4x256xf32> to vector<4x256xf32>
    %c0_2 = arith.constant 0 : index
    %c0_3 = arith.constant 0 : index
    %2 = vector.load %arg2[%c0_2, %c0_3] : memref<4x1xf32, #tpu.memory_space<vmem>>, vector<4x1xf32>
    %3 = vector.broadcast %2 : vector<4x1xf32> to vector<4x256xf32>
    %4 = arith.mulf %1, %3 : vector<4x256xf32>
    %c0_4 = arith.constant 0 : index
    %c0_5 = arith.constant 0 : index
    %5 = vector.load %arg3[%c0_4, %c0_5] : memref<4x1xf32, #tpu.memory_space<vmem>>, vector<4x1xf32>
    %6 = vector.broadcast %5 : vector<4x1xf32> to vector<4x256xf32>
    %7 = arith.addf %4, %6 : vector<4x256xf32>
    %cst = arith.constant 0.000000e+00 : f32
    %8 = vector.broadcast %cst : f32 to vector<4x256xf32>
    %9 = arith.cmpf oge, %7, %8 : vector<4x256xf32>
    %cst_6 = arith.constant 0.00999999977 : f32
    %10 = vector.broadcast %cst_6 : f32 to vector<4x256xf32>
    %11 = arith.mulf %10, %7 : vector<4x256xf32>
    %12 = arith.select %9, %7, %11 : vector<4x256xi1>, vector<4x256xf32>
    %c0_7 = arith.constant 0 : index
    %c0_8 = arith.constant 0 : index
    %c0_9 = arith.constant 0 : index
    %13 = vector.load %arg4[%c0_7, %c0_8, %c0_9] : memref<1x4x256xf32, #tpu.memory_space<vmem>>, vector<1x4x256xf32>
    %14 = vector.shape_cast %13 : vector<1x4x256xf32> to vector<4x256xf32>
    %15 = vector.shape_cast %12 : vector<4x256xf32> to vector<1x4x256xf32>
    tpu.vector_store %arg4[%c0_7, %c0_8, %c0_9], %15 {strides = array<i32>} : memref<1x4x256xf32, #tpu.memory_space<vmem>>, vector<1x4x256xf32>,
    return
  }
  func.func @transform_0(%arg0: i32) -> (i32, i32, i32) {
    %c0_i32 = arith.constant 0 : i32
    %c0_i32_0 = arith.constant 0 : i32
    %c0_i32_1 = arith.constant 0 : i32
    return %arg0, %c0_i32, %c0_i32_0 : i32, i32, i32
  }
  func.func @transform_1(%arg0: i32) -> (i32, i32) {
    %c0_i32 = arith.constant 0 : i32
    %c0_i32_0 = arith.constant 0 : i32
    %c0_i32_1 = arith.constant 0 : i32
    return %c0_i32, %c0_i32_0 : i32, i32
  }
  func.func @transform_2(%arg0: i32) -> (i32, i32) {
    %c0_i32 = arith.constant 0 : i32
    %c0_i32_0 = arith.constant 0 : i32
    %c0_i32_1 = arith.constant 0 : i32
    return %c0_i32, %c0_i32_0 : i32, i32
  }
  func.func @transform_3(%arg0: i32) -> (i32, i32, i32) {
    %c0_i32 = arith.constant 0 : i32
    %c0_i32_0 = arith.constant 0 : i32
    %c0_i32_1 = arith.constant 0 : i32
    return %arg0, %c0_i32, %c0_i32_0 : i32, i32, i32
  }
}

</mosaic_0001>

<bundles_post_ra>
// kernel: up_forward.3
= control target key start
LH: loop header
LB: loop body
LE: loop exit
PB: predicated region body
PF: predicated region fallthrough
CT: control target
= control target key end

     0   :  { %s478_s15 = smov 0   ;;  %s529_s0 = inlined_call_operand.vmem [shape: f32[2,72,256], index: 0, kind: input, shape index: {}]   ;;  %s530_s1 = inlined_call_operand.vmem [shape: f32[4,72], index: 1, kind: input, shape index: {}]   ;;  %s531_s2 = inlined_call_operand.vmem [shape: f32[2,4,256], index: 2, kind: output, shape index: {0}]   ;;  %s532_s3 = inlined_call_operand.vmem [shape: f32[2,4,1], index: 3, kind: output, shape index: {1}]   ;;  %s533_s4 = inlined_call_operand.vmem [shape: f32[2,4,1], index: 4, kind: output, shape index: {2}]  }
   0x1 LB: > { %s421_s16 = sadd.s32 4294967295, %s451_s15   ;;  %p425_p0 = scmp.ge.s32.totalorder %s451_s15, 1  ;;  %s451_s15 = sphi %s478_s15, %s15_s15  }
   0x2   : > { %p167_p1 = scmp.lt.s32.totalorder %s451_s15, 3 }
   0x4   : > { %p168_p2 = pnand %p425_p0, %p167_p1 }
   0x5   : > { %p201_p3 = scmp.lt.s32.totalorder (!%p168_p2), %s421_s16, 1 }
   0x6   : > { %171 = sbr.rel (%p168_p2) target bundleno = 287 (0x11f), region = 28 }
   0xb   : > { %s535_s16 = smov (!%p201_p3, %s421_s16), 1  ;;  %v219_v18 = vld [vmem:[%s530_s1] sm:$0xf]  ;;  %vm238_vm0 = vcmask 588800   ;;  %vm285_vm1 = vcmask 1043456   ;;  %vm294_vm2 = vcmask 3072  }
   0xc   : > { %s436_s17 = smul.u32 144, %s535_s16  ;;  %s435_s23 = sshll.u32 %s535_s16, 3 }
   0xd   : > { %s210_s26 = scalar_lea.vmem %s531_s2, %s435_s23  ;;  %s429_s27 = sshll.u32 %s535_s16, 2 }
   0xe   : > { %s492_s20 = scalar_lea.vmem %s529_s0, %s436_s17  ;;  %s214_s30 = scalar_lea.vmem %s532_s3, %s429_s27 }
   0xf   : > { %v236_v0 = vld [vmem:[%s492_s20 + $0x80] sm:$0xff]  ;;  %v237_v1 = vld [vmem:[%s492_s20 + $0x88] sm:$0xff]  ;;  %v234_v2 = vld [vmem:[%s492_s20 + $0x70] sm:$0xff]  ;;  %s218_s7 = scalar_lea.vmem %s533_s4, %s429_s27 }
  0x10   : > { %249 = vmatpush.msra.mxu0 %v236_v0  ;;  %269 = vmatpush.msra.mxu1 %v237_v1  ;;  %v235_v3 = vld [vmem:[%s492_s20 + $0x78] sm:$0xff]  ;;  %v232_v4 = vld [vmem:[%s492_s20 + $0x60] sm:$0xff]  ;;  %v233_v5 = vld [vmem:[%s492_s20 + $0x68] sm:$0xff] }
  0x11   : > { %v230_v6 = vld [vmem:[%s492_s20 + $0x50] sm:$0xff]  ;;  %v231_v7 = vld [vmem:[%s492_s20 + $0x58] sm:$0xff]  ;;  %v228_v8 = vld [vmem:[%s492_s20 + $0x40] sm:$0xff] }
  0x12   : > { %250 = vmatpush.msra.mxu0 %v234_v2  ;;  %270 = vmatpush.msra.mxu1 %v235_v3  ;;  %v229_v9 = vld [vmem:[%s492_s20 + $0x48] sm:$0xff]  ;;  %v226_v10 = vld [vmem:[%s492_s20 + $0x30] sm:$0xff]  ;;  %v227_v11 = vld [vmem:[%s492_s20 + $0x38] sm:$0xff] }
  0x13   : > { %v224_v12 = vld [vmem:[%s492_s20 + $0x20] sm:$0xff]  ;;  %v225_v13 = vld [vmem:[%s492_s20 + $0x28] sm:$0xff]  ;;  %v222_v14 = vld [vmem:[%s492_s20 + $0x10] sm:$0xff] }
  0x14   : > { %251 = vmatpush.msra.mxu0 %v232_v4  ;;  %271 = vmatpush.msra.mxu1 %v233_v5  ;;  %v223_v15 = vld [vmem:[%s492_s20 + $0x18] sm:$0xff]  ;;  %v220_v16 = vld [vmem:[%s492_s20] sm:$0xff]  ;;  %v221_v17 = vld [vmem:[%s492_s20 + $0x8] sm:$0xff] }
  0x16   : > { %252 = vmatpush.msra.mxu0 %v230_v6  ;;  %272 = vmatpush.msra.mxu1 %v231_v7 }
  0x18   : > { %253 = vmatpush.msra.mxu0 %v228_v8  ;;  %273 = vmatpush.msra.mxu1 %v229_v9 }
  0x1a   : > { %254 = vmatpush.msra.mxu0 %v226_v10  ;;  %274 = vmatpush.msra.mxu1 %v227_v11 }
  0x1c   : > { %255 = vmatpush.msra.mxu0 %v224_v12  ;;  %275 = vmatpush.msra.mxu1 %v225_v13 }
  0x1e   : > { %256 = vmatpush.msra.mxu0 %v222_v14  ;;  %276 = vmatpush.msra.mxu1 %v223_v15 }
  0x20   : > { %257 = vmatpush.msra.mxu0 %v220_v16  ;;  %277 = vmatpush.msra.mxu1 %v221_v17 }
  0x21   : > { %431 = vmatmul.msk.f32.vlgmr.msra.gmra.mxu0 %vm238_vm0, %v219_v18  ;;  %432 = vmatmul.msk.f32.vlgmr.msra.gmra.mxu1 %vm238_vm0, %v219_v18 }
  0x9e   : > { %v259_v19 = vpop.f32.mrf.mxu0  ;;  %v279_v20 = vpop.f32.mrf.mxu1 }
  0x9f   : > { %v284_v21 = vrot.slane %v279_v20, 4  ;;  %v289_v22 = vsel %vm285_vm1, %v259_v19, 0.0  ;;  %v290_v23 = vsel %vm285_vm1, %v279_v20, 0.0  ;;  %v296_v26 = vmul.f32 %v259_v19, %v259_v19 }
  0xa0   : > { %v291_v25 = vadd.f32 %v290_v23, %v289_v22  ;;  %v297_v27 = vmul.f32 %v279_v20, %v279_v20 }
  0xa1   : > { %v286_v24 = vsel %vm285_vm1, %v259_v19, %v284_v21  ;;  %v298_v28 = vsel %vm285_vm1, %v296_v26, 0.0 }
  0xa2   : > { %288 = vst [vmem:[%s210_s26] sm:$0xff] %v286_v24  ;;  %292 = vadd.xlane.f32.xlu0 %v291_v25  ;;  %v299_v29 = vsel %vm285_vm1, %v297_v27, 0.0 }
  0xa3   : > { %v300_v30 = vadd.f32 %v299_v29, %v298_v28 }
  0xaa   : > { %301 = vadd.xlane.f32.xlu0 %v300_v30 }
 0x115   : > { %v293_v31 = vpop.xlane.xlu0 %292 }
 0x116   : > { %295 = vst.msk [vmem:[%s214_s30] sm:$0xf] %vm294_vm2, %v293_v31 }
 0x11d   : > { %v302_v32 = vpop.xlane.xlu0 %301 }
 0x11e   : > { %303 = vst.msk [vmem:[%s218_s7] sm:$0xf] %vm294_vm2, %v302_v32 }
 0x11f PF: > { %s15_s15 = sadd.s32 1, %s451_s15  }
 0x120   : > { %p12_p4 = scmp.ge.s32.totalorder %s15_s15, 4  }
 0x122   :  { %14 = sbr.rel (!%p12_p4) target bundleno = 1 (0x1), region = 82 }

// kernel: up_forward.5
= control target key start
LH: loop header
LB: loop body
LE: loop exit
PB: predicated region body
PF: predicated region fallthrough
CT: control target
= control target key end

     0   :  { %s307_s12 = smov 0   ;;  %s330_s0 = inlined_call_operand.vmem [shape: f32[2,4,256], index: 0, kind: input, shape index: {}]   ;;  %s331_s1 = inlined_call_operand.vmem [shape: f32[4,1], index: 1, kind: input, shape index: {}]   ;;  %s332_s2 = inlined_call_operand.vmem [shape: f32[4,1], index: 2, kind: input, shape index: {}]   ;;  %s333_s3 = inlined_call_operand.vmem [shape: f32[2,4,256], index: 3, kind: output, shape index: {}]  }
   0x1 LB: > { %s253_s13 = sadd.s32 4294967295, %s283_s12   ;;  %p257_p0 = scmp.ge.s32.totalorder %s283_s12, 1  ;;  %s283_s12 = sphi %s307_s12, %s13_s12  }
   0x2   : > { %p137_p1 = scmp.lt.s32.totalorder %s283_s12, 3 }
   0x4   : > { %p138_p2 = pnand %p257_p0, %p137_p1 }
   0x5   : > { %p161_p3 = scmp.lt.s32.totalorder (!%p138_p2), %s253_s13, 1 }
   0x6   : > { %141 = sbr.rel (%p138_p2) target bundleno = 144 (0x90), region = 32 }
   0xb   : > { %v172_v0 = vld [vmem:[%s331_s1] sm:$0xf]  ;;  %v285_v1 = vmov 0   ;;  %s335_s13 = smov (!%p161_p3, %s253_s13), 1  ;;  %v286_v3 = vmov 839922192  }
   0xc   : > { %276 = vset.pattern.permute.xlu0 %v285_v1  ;;  %v183_v2 = vld [vmem:[%s332_s2] sm:$0xf]  ;;  %v178_v4 = vunpack.c.l.s4 %v286_v3  ;;  %s264_s18 = sshll.u32 %s335_s13, 3 }
   0xd   : > { %175 = vperm.xlu0 %276, %v172_v0   ;;  %s165_s21 = scalar_lea.vmem %s330_s0, %s264_s18  ;;  %s170_s24 = scalar_lea.vmem %s333_s3, %s264_s18 }
   0xe   : > { %v179_v6 = vunpack.c.0.s8 %v178_v4  ;;  %v171_v8 = vld [vmem:[%s165_s21] sm:$0xff] }
  0x15   : > { %186 = vperm.xlu0 %276, %v183_v2  }
  0x7f   : > { %v176_v5 = vpop.permute.xlu0 %175 }
  0x80   : > { %v180_v7 = vperm.slane %v176_v5, %v179_v6 }
  0x82   : > { %v182_v10 = vmul.f32 %v180_v7, %v171_v8 }
  0x87   : > { %v187_v9 = vpop.permute.xlu0 %186 }
  0x88   : > { %v191_v11 = vperm.slane %v187_v9, %v179_v6 }
  0x8a   : > { %v193_v12 = vadd.f32 %v191_v11, %v182_v10 }
  0x8c   : > { %vm194_vm0 = vcmp.ge.f32.partialorder %v193_v12, 0.0  ;;  %v195_v13 = vmul.f32 0.01, %v193_v12 }
  0x8e   : > { %v196_v14 = vsel %vm194_vm0, %v193_v12, %v195_v13 }
  0x8f   : > { %197 = vst [vmem:[%s170_s24] sm:$0xff] %v196_v14 }
  0x90 PF: > { %s13_s12 = sadd.s32 1, %s283_s12  }
  0x91   : > { %p10_p4 = scmp.ge.s32.totalorder %s13_s12, 4  }
  0x93   :  { %12 = sbr.rel (!%p10_p4) target bundleno = 1 (0x1), region = 62 }

// kernel: up_forward.4
= control target key start
LH: loop header
LB: loop body
LE: loop exit
PB: predicated region body
PF: predicated region fallthrough
CT: control target
= control target key end

     0   :  { %s637_s21 = smov 0   ;;  %s720_s0 = inlined_call_operand.vmem [shape: f32[2,36,256], index: 0, kind: input, shape index: {}]   ;;  %s721_s1 = inlined_call_operand.vmem [shape: f32[36,1], index: 1, kind: input, shape index: {}]   ;;  %s722_s2 = inlined_call_operand.vmem [shape: f32[36,256], index: 2, kind: input, shape index: {}]   ;;  %s723_s3 = inlined_call_operand.vmem [shape: f32[4,36], index: 3, kind: input, shape index: {}]   ;;  %s724_s4 = inlined_call_operand.vmem [shape: f32[2,4,256], index: 4, kind: output, shape index: {0}]   ;;  %s725_s5 = inlined_call_operand.vmem [shape: f32[2,4,1], index: 5, kind: output, shape index: {1}]   ;;  %s726_s6 = inlined_call_operand.vmem [shape: f32[2,4,1], index: 6, kind: output, shape index: {2}]  }
   0x1 LB: > { %s563_s22 = sadd.s32 4294967295, %s599_s21   ;;  %p567_p0 = scmp.ge.s32.totalorder %s599_s21, 1  ;;  %s599_s21 = sphi %s637_s21, %s17_s21  }
   0x2   : > { %p217_p1 = scmp.lt.s32.totalorder %s599_s21, 3 }
   0x4   : > { %p218_p2 = pnand %p567_p0, %p217_p1 }
   0x5   : > { %p255_p3 = scmp.lt.s32.totalorder (!%p218_p2), %s563_s22, 1 }
   0x6   : > { %221 = sbr.rel (%p218_p2) target bundleno = 399 (0x18f), region = 36 }
   0xb   : > { %v287_v0 = vld [vmem:[%s721_s1 + $0x20] sm:$0xf]  ;;  %v285_v1 = vld [vmem:[%s721_s1 + $0x10] sm:$0xff]  ;;  %v601_v2 = vmov 0   ;;  %v286_v4 = vld [vmem:[%s721_s1 + $0x18] sm:$0xff]  ;;  %s728_s22 = smov (!%p255_p3, %s563_s22), 1 }
   0xc   : > { %591 = vset.pattern.permute.xlu1 %v601_v2  ;;  %590 = vset.pattern.permute.xlu0 %v601_v2  ;;  %v283_v3 = vld [vmem:[%s721_s1] sm:$0xff]  ;;  %v284_v5 = vld [vmem:[%s721_s1 + $0x8] sm:$0xff]  ;;  %s580_s9 = smul.u32 80, %s728_s22  ;;  %vm378_vm0 = vcmask 1043456   ;;  %v329_v31 = vld [vmem:[%s722_s2 + $0x30] sm:$0xff]  ;;  %vm374_vm11 = vcmask 293888  }
   0xd   : > { %310 = vperm.xlu0 %590, %v287_v0   ;;  %300 = vperm.xlu1 %591, %v285_v1   ;;  %v331_v8 = vld [vmem:[%s722_s2 + $0x40] sm:$0xf]  ;;  %v332_v9 = vld [vmem:[%s722_s2 + $0x48] sm:$0xf]  ;;  %v330_v37 = vld [vmem:[%s722_s2 + $0x38] sm:$0xff]  ;;  %s579_s13 = sshll.u32 %s728_s22, 3 }
   0xe   : > { %592 = vset.pattern.permute.xlu2 %v601_v2  ;;  %s259_s12 = scalar_lea.vmem %s720_s0, %s580_s9  ;;  %v327_v18 = vld [vmem:[%s722_s2 + $0x20] sm:$0xff]  ;;  %v328_v19 = vld [vmem:[%s722_s2 + $0x28] sm:$0xff]  ;;  %v325_v39 = vld [vmem:[%s722_s2 + $0x10] sm:$0xff]  ;;  %s264_s16 = scalar_lea.vmem %s724_s4, %s579_s13  ;;  %vm436_vm12 = vcmask 3072  }
   0xf   : > { %290 = vperm.xlu2 %592, %v283_v3   ;;  %v281_v6 = vld [vmem:[%s259_s12 + $0x40] sm:$0xf]  ;;  %v282_v7 = vld [vmem:[%s259_s12 + $0x48] sm:$0xf]  ;;  %v279_v22 = vld [vmem:[%s259_s12 + $0x30] sm:$0xff]  ;;  %s571_s17 = sshll.u32 %s728_s22, 2 }
  0x10   : > { %v277_v14 = vld [vmem:[%s259_s12 + $0x20] sm:$0xff]  ;;  %v278_v15 = vld [vmem:[%s259_s12 + $0x28] sm:$0xff]  ;;  %v280_v28 = vld [vmem:[%s259_s12 + $0x38] sm:$0xff]  ;;  %s268_s20 = scalar_lea.vmem %s725_s5, %s571_s17  ;;  %s272_s25 = scalar_lea.vmem %s726_s6, %s571_s17 }
  0x11   : > { %v273_v24 = vld [vmem:[%s259_s12] sm:$0xff]  ;;  %v274_v25 = vld [vmem:[%s259_s12 + $0x8] sm:$0xff]  ;;  %v275_v29 = vld [vmem:[%s259_s12 + $0x10] sm:$0xff] }
  0x12   : > { %v276_v30 = vld [vmem:[%s259_s12 + $0x18] sm:$0xff]  ;;  %v323_v47 = vld [vmem:[%s722_s2] sm:$0xff]  ;;  %v324_v48 = vld [vmem:[%s722_s2 + $0x8] sm:$0xff] }
  0x13   : > { %v326_v40 = vld [vmem:[%s722_s2 + $0x18] sm:$0xff] }
  0x15   : > { %305 = vperm.xlu0 %590, %v286_v4   ;;  %295 = vperm.xlu1 %591, %v284_v5   ;;  %v373_v5 = vld [vmem:[%s723_s3] sm:$0xf] }
  0x69   : > { %v291_v23 = vpop.permute.xlu2 %290 }
  0x6a   : > { %v313_v34 = vmul.f32 %v291_v23, %v273_v24  ;;  %v314_v42 = vmul.f32 %v291_v23, %v274_v25 }
  0x6c   : > { %v333_v53 = vadd.f32 %v323_v47, %v313_v34  ;;  %v334_v54 = vadd.f32 %v324_v48, %v314_v42 }
  0x6e   : > { %v353_v1 = vmul.f32 0.01, %v333_v53  ;;  %v354_v2 = vmul.f32 0.01, %v334_v54  ;;  %vm343_vm9 = vcmp.ge.f32.partialorder %v333_v53, 0.0  ;;  %vm344_vm10 = vcmp.ge.f32.partialorder %v334_v54, 0.0 }
  0x7f   : > { %v311_v10 = vpop.permute.xlu0 %310  ;;  %v301_v11 = vpop.permute.xlu1 %300 }
  0x80   : > { %v321_v12 = vmul.f32 %v311_v10, %v281_v6  ;;  %v322_v13 = vmul.f32 %v311_v10, %v282_v7  ;;  %v317_v20 = vmul.f32 %v301_v11, %v277_v14  ;;  %v318_v21 = vmul.f32 %v301_v11, %v278_v15 }
  0x81   : > { %v363_v6 = vsel %vm343_vm9, %v333_v53, %v353_v1  ;;  %v364_v7 = vsel %vm344_vm10, %v334_v54, %v354_v2 }
  0x82   : > { %v341_v16 = vadd.f32 %v331_v8, %v321_v12  ;;  %v342_v17 = vadd.f32 %v332_v9, %v322_v13  ;;  %v337_v35 = vadd.f32 %v327_v18, %v317_v20  ;;  %v338_v36 = vadd.f32 %v328_v19, %v318_v21 }
  0x84   : > { %vm351_vm1 = vcmp.ge.f32.partialorder %v341_v16, 0.0  ;;  %v361_v26 = vmul.f32 0.01, %v341_v16  ;;  %vm352_vm2 = vcmp.ge.f32.partialorder %v342_v17, 0.0  ;;  %v362_v27 = vmul.f32 0.01, %v342_v17 }
  0x85   : > { %v357_v55 = vmul.f32 0.01, %v337_v35  ;;  %v358_v56 = vmul.f32 0.01, %v338_v36  ;;  %vm347_vm5 = vcmp.ge.f32.partialorder %v337_v35, 0.0  ;;  %vm348_vm6 = vcmp.ge.f32.partialorder %v338_v36, 0.0 }
  0x86   : > { %v371_v32 = vsel %vm351_vm1, %v341_v16, %v361_v26  ;;  %v372_v33 = vsel %vm352_vm2, %v342_v17, %v362_v27 }
  0x87   : > { %v306_v38 = vpop.permute.xlu0 %305  ;;  %v296_v41 = vpop.permute.xlu1 %295  ;;  %573 = vmatpush.msk.msra.mxu0 %vm378_vm0, %v371_v32  ;;  %575 = vmatpush.msk.msra.mxu1 %vm378_vm0, %v372_v33  ;;  %v367_v63 = vsel %vm347_vm5, %v337_v35, %v357_v55  ;;  %v368_v0 = vsel %vm348_vm6, %v338_v36, %v358_v56 }
  0x88   : > { %v319_v43 = vmul.f32 %v306_v38, %v279_v22  ;;  %v320_v44 = vmul.f32 %v306_v38, %v280_v28  ;;  %v315_v45 = vmul.f32 %v296_v41, %v275_v29  ;;  %v316_v46 = vmul.f32 %v296_v41, %v276_v30 }
  0x8a   : > { %v339_v49 = vadd.f32 %v329_v31, %v319_v43  ;;  %v340_v50 = vadd.f32 %v330_v37, %v320_v44  ;;  %v335_v51 = vadd.f32 %v325_v39, %v315_v45  ;;  %v336_v52 = vadd.f32 %v326_v40, %v316_v46 }
  0x8c   : > { %vm349_vm3 = vcmp.ge.f32.partialorder %v339_v49, 0.0  ;;  %v359_v57 = vmul.f32 0.01, %v339_v49  ;;  %vm350_vm4 = vcmp.ge.f32.partialorder %v340_v50, 0.0  ;;  %v360_v58 = vmul.f32 0.01, %v340_v50 }
  0x8d   : > { %v355_v61 = vmul.f32 0.01, %v335_v51  ;;  %v356_v62 = vmul.f32 0.01, %v336_v52  ;;  %vm345_vm7 = vcmp.ge.f32.partialorder %v335_v51, 0.0  ;;  %vm346_vm8 = vcmp.ge.f32.partialorder %v336_v52, 0.0 }
  0x8e   : > { %v369_v59 = vsel %vm349_vm3, %v339_v49, %v359_v57  ;;  %v370_v60 = vsel %vm350_vm4, %v340_v50, %v360_v58 }
  0x8f   : > { %397 = vmatpush.msra.mxu0 %v369_v59  ;;  %417 = vmatpush.msra.mxu1 %v370_v60  ;;  %v365_v3 = vsel %vm345_vm7, %v335_v51, %v355_v61  ;;  %v366_v4 = vsel %vm346_vm8, %v336_v52, %v356_v62 }
  0x91   : > { %398 = vmatpush.msra.mxu0 %v367_v63  ;;  %418 = vmatpush.msra.mxu1 %v368_v0 }
  0x93   : > { %399 = vmatpush.msra.mxu0 %v365_v3  ;;  %419 = vmatpush.msra.mxu1 %v366_v4 }
  0x95   : > { %400 = vmatpush.msra.mxu0 %v363_v6  ;;  %420 = vmatpush.msra.mxu1 %v364_v7 }
  0x96   : > { %574 = vmatmul.msk.f32.vlgmr.msra.gmra.mxu0 %vm374_vm11, %v373_v5  ;;  %576 = vmatmul.msk.f32.vlgmr.msra.gmra.mxu1 %vm374_vm11, %v373_v5 }
 0x113   : > { %v402_v8 = vpop.f32.mrf.mxu0  ;;  %v422_v9 = vpop.f32.mrf.mxu1 }
 0x114   : > { %v431_v10 = vsel %vm378_vm0, %v402_v8, 0.0  ;;  %v438_v11 = vmul.f32 %v402_v8, %v402_v8  ;;  %v427_v12 = vrot.slane %v422_v9, 4  ;;  %v432_v13 = vsel %vm378_vm0, %v422_v9, 0.0 }
 0x115   : > { %v439_v14 = vmul.f32 %v422_v9, %v422_v9  ;;  %v433_v15 = vadd.f32 %v432_v13, %v431_v10 }
 0x116   : > { %v428_v16 = vsel %vm378_vm0, %v402_v8, %v427_v12  ;;  %v440_v17 = vsel %vm378_vm0, %v438_v11, 0.0 }
 0x117   : > { %430 = vst [vmem:[%s264_s16] sm:$0xff] %v428_v16  ;;  %434 = vadd.xlane.f32.xlu2 %v433_v15  ;;  %v441_v18 = vsel %vm378_vm0, %v439_v14, 0.0 }
 0x118   : > { %v442_v19 = vadd.f32 %v441_v18, %v440_v17 }
 0x11a   : > { %443 = vadd.xlane.f32.xlu0 %v442_v19 }
 0x18a   : > { %v435_v20 = vpop.xlane.xlu2 %434 }
 0x18b   : > { %437 = vst.msk [vmem:[%s268_s20] sm:$0xf] %vm436_vm12, %v435_v20 }
 0x18d   : > { %v444_v21 = vpop.xlane.xlu0 %443 }
 0x18e   : > { %445 = vst.msk [vmem:[%s272_s25] sm:$0xf] %vm436_vm12, %v444_v21 }
 0x18f PF: > { %s17_s21 = sadd.s32 1, %s599_s21  }
 0x190   : > { %p14_p4 = scmp.ge.s32.totalorder %s17_s21, 4  }
 0x192   :  { %16 = sbr.rel (!%p14_p4) target bundleno = 1 (0x1), region = 90 }

</bundles_post_ra>
